<compile_context>
chip_gen: v6e
topology: v6e:2x2x1
jax: 0.10.0
libtpu: 0.0.40
codegen_flags: <defaults>
</compile_context>

<pallas_src>
import jax
import jax.numpy as jnp
import numpy as np
from jax.experimental import pallas as pl
from jax.experimental.pallas import tpu as pltpu


def _round_up(x, m):
    return ((x + m - 1) // m) * m


def _cdiv(a, b):
    return -(-a // b)


def _attn_kernel(q_ref, v_ref, bias_ref, wq_t_ref, wv_t_ref, w2_ref, o_ref):
    # q_ref   : (bm, hp)      decoder-state block          (mxu dtype)
    # v_ref   : (bm*tp, hp)   encoder states, time-flat    (mxu dtype)
    # bias_ref: (bm, tp)      additive mask bias f32 (0 valid / -1e9 masked+pad)
    # wq_t_ref: (hp, hp)      W1[:, :h].T padded           (mxu dtype)
    # wv_t_ref: (hp, hp)      W1[:, h:].T padded           (mxu dtype)
    # w2_ref  : (1, hp)       W2 row vector padded, f32
    # o_ref   : (bm, hp)      f32
    bm, hp = q_ref.shape
    tp = bias_ref.shape[1]

    q = q_ref[...]                                       # (bm, hp)
    v2 = v_ref[...]                                      # (bm*tp, hp)

    # hidden = tanh(q @ Wq^T + v @ Wv^T): two MXU calls, f32 accumulation.
    hq = jnp.dot(q, wq_t_ref[...], preferred_element_type=jnp.float32)    # (bm, hp)
    hv = jnp.dot(v2, wv_t_ref[...], preferred_element_type=jnp.float32)   # (bm*tp, hp)
    # f32 tanh (v5e EUP has no bf16; keeps accuracy tight on v6e/v7x too).
    hidden = jnp.tanh(hv.reshape(bm, tp, hp) + hq[:, None, :])            # (bm, tp, hp)

    # score = hidden @ W2^T as a lane-dense VPU multiply + lane reduce
    # (N=1 MXU matmul avoided); masked / padded positions get -1e9 added.
    w2row = w2_ref[...]                                                   # (1, hp) f32
    score = jnp.sum(hidden * w2row[None, :, :], axis=-1) + bias_ref[...]  # (bm, tp)

    # Exact f32 softmax over t.
    m = jnp.max(score, axis=1, keepdims=True)
    e = jnp.exp(score - m)
    ws = e / jnp.sum(e, axis=1, keepdims=True)                            # (bm, tp)

    # out = sum_t ws * v : multiply f32 weights directly against the (possibly
    # bf16) v tile -- the cast fuses into the multiply, no f32 copy of v in VMEM.
    v3 = v2.reshape(bm, tp, hp)
    o_ref[...] = jnp.sum(ws[:, :, None] * v3, axis=1).astype(o_ref.dtype)


def attentive_attention(q, v, w1, w2, mask=None, *, use_bf16_mxu=True):
    """AttentiveAttention forward.

    q: (b, h), v: (b, t, h),
    w1: (h, 2h) == nn.Linear(2h, h, bias=False).weight,
    w2: (1, h)  == nn.Linear(h, 1, bias=False).weight,
    mask: (b, t) int (0 => masked) or None.
    """
    b, h = q.shape
    _, t, _ = v.shape
    if mask is None:
        mask = jnp.ones((b, t), dtype=jnp.int32)

    hp = _round_up(h, 128)      # lane-dense last dim (unmasked vst)
    tp = _round_up(t, 8)        # sublane-aligned time dim (clean reshapes)

    mxu_dtype = jnp.bfloat16 if use_bf16_mxu else jnp.float32
    itemsize = jnp.dtype(mxu_dtype).itemsize

    # --- VMEM budget & batch-block selection ----------------------------------
    # Limit derived from the actual chip: ~96 MiB on v5e/v6e (128 MiB physical),
    # ~48 MiB on v7x (64 MiB physical).  Falls back conservatively off-TPU.
    try:
        vmem_phys = int(pltpu.get_tpu_info().vmem_capacity_bytes)
    except Exception:
        vmem_phys = 64 * 1024 * 1024
    vmem_limit = min(96 * 1024 * 1024, (vmem_phys * 3) // 4)
    vmem_limit = max(vmem_limit, 32 * 1024 * 1024)

    # Peak-VMEM accounting: double-buffered weight blocks (constant index map ->
    # DMA'd once, but the pipeline still allocates 2 buffers each), double-
    # buffered v tile, ~3x f32 per-element intermediates (hidden / hv / exp),
    # plus the small q / bias / out tiles.
    weight_bytes = 2 * (2 * hp * hp * itemsize) + 2 * 8 * hp * 4
    per_row_bytes = (tp * hp * (2 * itemsize + 3 * 4)
                     + 2 * hp * (itemsize + 4)
                     + 2 * tp * 4)
    budget = int(vmem_limit * 0.9) - weight_bytes - (2 << 20)
    bm_cap = max(8, (max(budget, 0) // per_row_bytes // 8) * 8)

    # >= 2 grid steps so the dominant v DMA pipelines behind compute; even step
    # count so both v7x TensorCores get equal batch blocks; >= 4 steps when the
    # batch is big enough to keep blocks at >= 64 rows.
    nb = max(2, _cdiv(b, bm_cap))
    if b >= 4 * 64:
        nb = max(nb, 4)
    if nb % 2:
        nb += 1
    bm = min(bm_cap, _round_up(_cdiv(b, nb), 8))
    nb = max(nb, _cdiv(b, bm))
    if nb % 2:
        nb += 1
    b_pad = bm * nb

    needs_pad = (hp != h) or (tp != t) or (b_pad != b)

    # --- small operands (q block, mask bias, weights): always (re)built -------
    q_p = jnp.zeros((b_pad, hp), mxu_dtype).at[:b, :h].set(q.astype(mxu_dtype))

    bias = jnp.where(mask != 0, 0.0, -1e9).astype(jnp.float32)            # (b, t)
    bias_p = jnp.full((b_pad, tp), -1e9, jnp.float32).at[:b, :t].set(bias)

    # Split W1 into q-part and v-part (cat order is [q, v]); transpose for x@W^T.
    wq_t = jnp.zeros((hp, hp), mxu_dtype).at[:h, :h].set(
        jnp.transpose(w1[:, :h]).astype(mxu_dtype))
    wv_t = jnp.zeros((hp, hp), mxu_dtype).at[:h, :h].set(
        jnp.transpose(w1[:, h:]).astype(mxu_dtype))
    w2_p = jnp.zeros((1, hp), jnp.float32).at[:, :h].set(w2.astype(jnp.float32))

    # --- v: the bandwidth-dominant operand -------------------------------------
    if needs_pad:
        # Single-pass pad+cast directly in the MXU dtype (only for unaligned
        # shapes; aligned production shapes take the zero-copy branch below).
        v_in = (jnp.zeros((b_pad, tp, hp), mxu_dtype)
                .at[:b, :t, :h].set(v.astype(mxu_dtype))
                .reshape(b_pad * tp, hp))
    else:
        # No padding needed: reshape is free; astype is a no-op when v already
        # arrives in the MXU dtype (the expected hot-path case).
        v_in = v.astype(mxu_dtype).reshape(b * t, h)

    out_p = pl.pallas_call(
        _attn_kernel,
        out_shape=jax.ShapeDtypeStruct((b_pad, hp), jnp.float32),
        grid_spec=pltpu.PrefetchScalarGridSpec(
            num_scalar_prefetch=0,
            grid=(nb,),
            in_specs=[
                pl.BlockSpec((bm, hp), lambda i: (i, 0)),        # q block
                pl.BlockSpec((bm * tp, hp), lambda i: (i, 0)),   # v (time-flat)
                pl.BlockSpec((bm, tp), lambda i: (i, 0)),        # mask bias
                pl.BlockSpec((hp, hp), lambda i: (0, 0)),        # Wq^T (shared)
                pl.BlockSpec((hp, hp), lambda i: (0, 0)),        # Wv^T (shared)
                pl.BlockSpec((1, hp), lambda i: (0, 0)),         # W2 row (shared)
            ],
            out_specs=pl.BlockSpec((bm, hp), lambda i: (i, 0)),
        ),
        compiler_params=pltpu.CompilerParams(
            dimension_semantics=("parallel",),    # batch blocks shard across TCs
            vmem_limit_bytes=vmem_limit,
        ),
    )(q_p, v_in, bias_p, wq_t, wv_t, w2_p)

    return out_p[:b, :h]


def attentive_attention_ref(q, v, w1, w2, mask=None):
    """Pure-JAX reference matching the PyTorch forward exactly (f32)."""
    b, t, h = v.shape
    qs = jnp.broadcast_to(q[:, None, :], (b, t, h))
    cat = jnp.concatenate([qs, v], axis=-1)                 # (b, t, 2h)
    hidden = jnp.tanh(jnp.einsum('btk,hk->bth', cat, w1))   # (b, t, h)
    score = jnp.einsum('bth,oh->bto', hidden, w2)           # (b, t, 1)
    if mask is not None:
        score = jnp.where(mask[:, :, None] == 0, -1e9, score)
    ws = jax.nn.softmax(score, axis=1)
    return jnp.sum(ws * v, axis=1)                          # (b, h)


if __name__ == "__main__":
    key = jax.random.PRNGKey(0)
    b, t, h = 2, 8, 32

    k_q, k_v, k_w1, k_w2, k_m = jax.random.split(key, 5)
    q = jax.random.normal(k_q, (b, h), dtype=jnp.float32)
    v = jax.random.normal(k_v, (b, t, h), dtype=jnp.float32)

    # nn.Linear(2h, h, bias=False): weight (h, 2h); nn.Linear(h, 1, bias=False): (1, h)
    bound1 = 1.0 / np.sqrt(2 * h)
    bound2 = 1.0 / np.sqrt(h)
    w1 = jax.random.uniform(k_w1, (h, 2 * h), minval=-bound1, maxval=bound1,
                            dtype=jnp.float32)
    w2 = jax.random.uniform(k_w2, (1, h), minval=-bound2, maxval=bound2,
                            dtype=jnp.float32)

    # Deterministic mask with a few masked-out positions.
    mask = (jax.random.uniform(k_m, (b, t)) > 0.2).astype(jnp.int32)
    mask = mask.at[:, 0].set(1)  # ensure at least one valid position per row

    ref = attentive_attention_ref(q, v, w1, w2, mask)

    # Default path: bf16 MXU operands (bandwidth-bound regime), f32 accumulation.
    out_bf16 = jax.block_until_ready(attentive_attention(q, v, w1, w2, mask))
    np.testing.assert_allclose(np.asarray(out_bf16), np.asarray(ref),
                               rtol=3e-2, atol=3e-2)

    # Exact f32 path: tight check that the kernel structure matches the module.
    out_f32 = jax.block_until_ready(
        attentive_attention(q, v, w1, w2, mask, use_bf16_mxu=False))
    np.testing.assert_allclose(np.asarray(out_f32), np.asarray(ref),
                               rtol=1e-5, atol=1e-5)

    print("KERNEL_OK")
</pallas_src>

<mosaic_0001>
module attributes {stable_mosaic.version = 11 : i64} {
  func.func @_attn_kernel(%arg0: i32, %arg1: memref<8x128xbf16, #tpu.memory_space<vmem>>, %arg2: memref<64x128xbf16, #tpu.memory_space<vmem>>, %arg3: memref<8x8xf32, #tpu.memory_space<vmem>>, %arg4: memref<128x128xbf16, #tpu.memory_space<vmem>>, %arg5: memref<128x128xbf16, #tpu.memory_space<vmem>>, %arg6: memref<1x128xf32, #tpu.memory_space<vmem>>, %arg7: memref<8x128xf32, #tpu.memory_space<vmem>>) attributes {dimension_semantics = [#tpu.dimension_semantics<parallel>], iteration_bounds = array<i64: 2>, scalar_prefetch = 0 : i64, scratch_operands = 0 : i64, tpu.core_type = #tpu.core_type<tc>, window_params = [{transform_indices = @transform_0, window_bounds = array<i64: 8, 128>}, {transform_indices = @transform_1, window_bounds = array<i64: 64, 128>}, {transform_indices = @transform_2, window_bounds = array<i64: 8, 8>}, {pipeline_mode = #tpu.pipeline_mode<synchronous>, transform_indices = @transform_3, window_bounds = array<i64: 128, 128>}, {pipeline_mode = #tpu.pipeline_mode<synchronous>, transform_indices = @transform_4, window_bounds = array<i64: 128, 128>}, {pipeline_mode = #tpu.pipeline_mode<synchronous>, transform_indices = @transform_5, window_bounds = array<i64: 1, 128>}, {transform_indices = @transform_6, window_bounds = array<i64: 8, 128>}]} {
    %c0 = arith.constant 0 : index
    %c0_0 = arith.constant 0 : index
    %0 = vector.load %arg1[%c0, %c0_0] : memref<8x128xbf16, #tpu.memory_space<vmem>>, vector<8x128xbf16>
    %c0_1 = arith.constant 0 : index
    %c0_2 = arith.constant 0 : index
    %1 = vector.load %arg2[%c0_1, %c0_2] : memref<64x128xbf16, #tpu.memory_space<vmem>>, vector<64x128xbf16>
    %c0_3 = arith.constant 0 : index
    %c0_4 = arith.constant 0 : index
    %2 = vector.load %arg4[%c0_3, %c0_4] : memref<128x128xbf16, #tpu.memory_space<vmem>>, vector<128x128xbf16>
    %cst = arith.constant dense<0.000000e+00> : vector<8x128xf32>
    %3 = tpu.matmul %0, %2, %cst {dimension_numbers = #tpu.dot_dimension_numbers<[1], [0], [0], [1], [0, 0, 1, 1], [], []>} : vector<8x128xbf16>, vector<128x128xbf16>, vector<8x128xf32> -> vector<8x128xf32>
    %c0_5 = arith.constant 0 : index
    %c0_6 = arith.constant 0 : index
    %4 = vector.load %arg5[%c0_5, %c0_6] : memref<128x128xbf16, #tpu.memory_space<vmem>>, vector<128x128xbf16>
    %cst_7 = arith.constant dense<0.000000e+00> : vector<64x128xf32>
    %5 = tpu.matmul %1, %4, %cst_7 {dimension_numbers = #tpu.dot_dimension_numbers<[1], [0], [0], [1], [0, 0, 1, 1], [], []>} : vector<64x128xbf16>, vector<128x128xbf16>, vector<64x128xf32> -> vector<64x128xf32>
    %6 = vector.shape_cast %5 : vector<64x128xf32> to vector<8x8x128xf32>
    %7 = vector.shape_cast %3 : vector<8x128xf32> to vector<8x1x128xf32>
    %8 = vector.broadcast %7 : vector<8x1x128xf32> to vector<8x8x128xf32>
    %9 = arith.addf %6, %8 : vector<8x8x128xf32>
    %10 = math.tanh %9 : vector<8x8x128xf32>
    %c0_8 = arith.constant 0 : index
    %c0_9 = arith.constant 0 : index
    %11 = vector.load %arg6[%c0_8, %c0_9] : memref<1x128xf32, #tpu.memory_space<vmem>>, vector<1x128xf32>
    %12 = vector.shape_cast %11 : vector<1x128xf32> to vector<1x1x128xf32>
    %13 = vector.broadcast %12 : vector<1x1x128xf32> to vector<8x8x128xf32>
    %14 = arith.mulf %10, %13 : vector<8x8x128xf32>
    %cst_10 = arith.constant dense<0.000000e+00> : vector<8x8xf32>
    %15 = vector.multi_reduction <add>, %14, %cst_10 [2] : vector<8x8x128xf32> to vector<8x8xf32>
    %c0_11 = arith.constant 0 : index
    %c0_12 = arith.constant 0 : index
    %16 = vector.load %arg3[%c0_11, %c0_12] : memref<8x8xf32, #tpu.memory_space<vmem>>, vector<8x8xf32>
    %17 = arith.addf %15, %16 : vector<8x8xf32>
    %cst_13 = arith.constant dense<0xFF800000> : vector<8xf32>
    %18 = vector.multi_reduction <maximumf>, %17, %cst_13 [1] : vector<8x8xf32> to vector<8xf32>
    %19 = vector.shape_cast %18 : vector<8xf32> to vector<8x1xf32>
    %20 = vector.broadcast %19 : vector<8x1xf32> to vector<8x8xf32>
    %21 = arith.subf %17, %20 : vector<8x8xf32>
    %22 = math.exp %21 : vector<8x8xf32>
    %cst_14 = arith.constant dense<0.000000e+00> : vector<8xf32>
    %23 = vector.multi_reduction <add>, %22, %cst_14 [1] : vector<8x8xf32> to vector<8xf32>
    %24 = vector.shape_cast %23 : vector<8xf32> to vector<8x1xf32>
    %25 = vector.broadcast %24 : vector<8x1xf32> to vector<8x8xf32>
    %26 = arith.divf %22, %25 : vector<8x8xf32>
    %27 = vector.shape_cast %1 : vector<64x128xbf16> to vector<8x8x128xbf16>
    %28 = vector.shape_cast %26 : vector<8x8xf32> to vector<8x8x1xf32>
    %29 = arith.extf %27 : vector<8x8x128xbf16> to vector<8x8x128xf32>
    %30 = vector.broadcast %28 : vector<8x8x1xf32> to vector<8x8x128xf32>
    %31 = arith.mulf %30, %29 : vector<8x8x128xf32>
    %cst_15 = arith.constant dense<0.000000e+00> : vector<8x128xf32>
    %32 = vector.multi_reduction <add>, %31, %cst_15 [1] : vector<8x8x128xf32> to vector<8x128xf32>
    %c0_16 = arith.constant 0 : index
    %c0_17 = arith.constant 0 : index
    %33 = vector.load %arg7[%c0_16, %c0_17] : memref<8x128xf32, #tpu.memory_space<vmem>>, vector<8x128xf32>
    tpu.vector_store %arg7[%c0_16, %c0_17], %32 {strides = array<i32>} : memref<8x128xf32, #tpu.memory_space<vmem>>, vector<8x128xf32>,
    return
  }
  func.func @transform_0(%arg0: i32) -> (i32, i32) {
    %c0_i32 = arith.constant 0 : i32
    %c0_i32_0 = arith.constant 0 : i32
    return %arg0, %c0_i32 : i32, i32
  }
  func.func @transform_1(%arg0: i32) -> (i32, i32) {
    %c0_i32 = arith.constant 0 : i32
    %c0_i32_0 = arith.constant 0 : i32
    return %arg0, %c0_i32 : i32, i32
  }
  func.func @transform_2(%arg0: i32) -> (i32, i32) {
    %c0_i32 = arith.constant 0 : i32
    %c0_i32_0 = arith.constant 0 : i32
    return %arg0, %c0_i32 : i32, i32
  }
  func.func @transform_3(%arg0: i32) -> (i32, i32) {
    %c0_i32 = arith.constant 0 : i32
    %c0_i32_0 = arith.constant 0 : i32
    %c0_i32_1 = arith.constant 0 : i32
    return %c0_i32, %c0_i32_0 : i32, i32
  }
  func.func @transform_4(%arg0: i32) -> (i32, i32) {
    %c0_i32 = arith.constant 0 : i32
    %c0_i32_0 = arith.constant 0 : i32
    %c0_i32_1 = arith.constant 0 : i32
    return %c0_i32, %c0_i32_0 : i32, i32
  }
  func.func @transform_5(%arg0: i32) -> (i32, i32) {
    %c0_i32 = arith.constant 0 : i32
    %c0_i32_0 = arith.constant 0 : i32
    %c0_i32_1 = arith.constant 0 : i32
    return %c0_i32, %c0_i32_0 : i32, i32
  }
  func.func @transform_6(%arg0: i32) -> (i32, i32) {
    %c0_i32 = arith.constant 0 : i32
    %c0_i32_0 = arith.constant 0 : i32
    return %arg0, %c0_i32 : i32, i32
  }
}

</mosaic_0001>

<bundles_post_ra>
// kernel: tpu_custom_call.1
= control target key start
LH: loop header
LB: loop body
LE: loop exit
PB: predicated region body
PF: predicated region fallthrough
CT: control target
= control target key end

     0   :  { %11 = vsyncpa [#allocation3], 0  ;;  %s2191_s0 = inlined_call_operand.vmem [shape: bf16[16,128], index: 0, kind: input, shape index: {}]   ;;  %s2192_s1 = inlined_call_operand.hbm [shape: bf16[128,128], index: 1, kind: input, shape index: {}]   ;;  %s2193_s2 = inlined_call_operand.vmem [shape: f32[16,8], index: 2, kind: input, shape index: {}]   ;;  %s2194_s3 = inlined_call_operand.hbm [shape: bf16[128,128], index: 3, kind: input, shape index: {}]   ;;  %s2195_s4 = inlined_call_operand.hbm [shape: bf16[128,128], index: 4, kind: input, shape index: {}]   ;;  %s2196_s5 = inlined_call_operand.vmem [shape: f32[1,128], index: 5, kind: input, shape index: {}]   ;;  %s2197_s6 = inlined_call_operand.hbm [shape: f32[16,128], index: 6, kind: output, shape index: {}]  }
   0x1   :  { %13 = vsyncpa [#allocation3 + $0x1], 0 }
   0x2   :  { %14 = vsyncpa [#allocation6], 0 }
   0x3   :  { %15 = vsyncpa [#allocation4], 0 }
   0x4   :  { %17 = vsyncpa [#allocation4 + $0x1], 0  ;;  %s1790_s21 = smov 0   ;;  %s1792_s22 = smov 0  }
   0x5   :  { %s1794_s23 = smov 0   ;;  %s1796_s24 = smov 0  }
   0x6 LB: > { %s1811_s25 = sadd.s32 4294967295, %s1743_s24   ;;  %s1342_s26 = sadd.s32 4294967294, %s1743_s24   ;;  %s1743_s24 = sphi %s1796_s24, %s2222_s24   ;;  %s1739_s23 = sphi %s1794_s23, %s2221_s23   ;;  %s1735_s22 = sphi %s1792_s22, %s2220_s22   ;;  %s1731_s21 = sphi %s1790_s21, %s2219_s21  }
   0x7   : > { %p69_p0 = scmp.ne.s32.totalorder %s1735_s22, %s1731_s21  ;;  %p2198_p1 = scmp.eq.s32.totalorder %s1811_s25, 0 }
   0x8   : > { %p182_p2 = scmp.eq.s32.totalorder %s1811_s25, 1  ;;  %p188_p3 = scmp.eq.s32.totalorder %s1342_s26, 1 }
   0x9   : > { %p1820_p4 = por %p2198_p1, %p69_p0  ;;  %p1343_p5 = scmp.ge.s32.totalorder %s1743_s24, 1 }
   0xa   : > { %p1825_p6 = por %p188_p3, %p69_p0  ;;  %p195_p7 = scmp.lt.s32.totalorder %s1743_s24, 3 }
   0xb   : > { %s2204_s27 = scalar_select %p1820_p4, 1, 0 }
   0xc   : > { %s2205_s28 = scalar_select %p1825_p6, 1, 0 }
   0xd   : > { %p1830_p8 = pnand %p1343_p5, %p195_p7  ;;  %s1745_s30 = smov [#allocation5]  }
   0xe   : > { %s207_s7 = sshll.u32 %s1745_s30, 4  ;;  %s1746_s9 = smov [#allocation7]   ;;  %s208_s7 = int_to_ptr.vmem [resolvable:$true] %s207_s7 }
   0xf   : > { %s2206_s29 = scalar_select %p1830_p8, 1, 0 }
  0x10   : > { %p1460_p9 = pneg %p1830_p8  ;;  %s220_s10 = sshll.u32 %s1746_s9, 4  ;;  %s221_s10 = int_to_ptr.vmem [resolvable:$true] %s220_s10 }
  0x11   : > { %s1606_s11 = scalar_lea.vmem %s208_s7, 1024  ;;  %p1614_p5 = scmp.lt.s32.totalorder %s208_s7, %s208_s7 }
  0x12   : > { %p1839_p11 = pnand %p1460_p9, %p2198_p1  ;;  %p1607_p13 = scmp.ne.s32.totalorder %s208_s7, %s1606_s11 }
  0x13   : > { %p1615_p7 = scmp.lt.s32.totalorder %s1606_s11, %s1606_s11 }
  0x14   : > { %p1597_p12 = pneg %p1839_p11 }
  0x15   : > { %p1616_p10 = por %p1615_p7, %p1614_p5 }
  0x16   : > { %p1609_p0 = pnand %p1607_p13, %p1597_p12 }
  0x18   : > { %p1610_p3 = pneg %p1609_p0 }
  0x1a   : > { %p1617_p9 = pnand %p1616_p10, %p1610_p3 }
  0x1c   : > { %1620 = shalt.err (!%p1617_p9)
}
  0x1d   : > { %s2199_s12 = smov 64   ;;  %s2200_s13 = smov 4  }
  0x1e   : > { %1463 = dma.hbm_to_vmem [thread:$0]  (!%p1839_p11), %s2194_s3, 1024, %s208_s7, [#allocation6], %s2199_s12, %s2199_s12, %s2200_s13  }
  0x1f   : > { %s1632_s16 = scalar_lea.vmem %s221_s10, 1024  ;;  %p1640_p10 = scmp.lt.s32.totalorder %s221_s10, %s221_s10 }
  0x20   : > { %p1633_p13 = scmp.ne.s32.totalorder %s221_s10, %s1632_s16  ;;  %p1641_p3 = scmp.lt.s32.totalorder %s1632_s16, %s1632_s16 }
  0x22   : > { %p1635_p0 = pnand %p1633_p13, %p1597_p12  ;;  %p1642_p7 = por %p1641_p3, %p1640_p10 }
  0x24   : > { %p1636_p5 = pneg %p1635_p0 }
  0x26   : > { %p1643_p9 = pnand %p1642_p7, %p1636_p5 }
  0x28   : > { %1646 = shalt.err (!%p1643_p9)
}
  0x29   : > { %1466 = dma.hbm_to_vmem [thread:$0]  (!%p1839_p11), %s2195_s4, 1024, %s221_s10, [#allocation6], %s2199_s12, %s2199_s12, %s2200_s13  }
  0x2a   : > { %s1868_s19 = sadd.s32 1, %s1743_s24   ;;  %s56_s20 = sadd.s32 1, %s1739_s23 }
  0x2b   : > { %s53_s26 = ssub.s32 %s1743_s24, %s1868_s19  ;;  %p63_p12 = scmp.ne.s32.totalorder %s1739_s23, %s1735_s22 }
  0x2c   : > { %p54_p13 = scmp.eq.s32.totalorder %s53_s26, 0  ;;  %p64_p0 = scmp.eq.s32.totalorder %s1743_s24, 0 }
  0x2d   : > { %p1878_p5 = por %p182_p2, %p63_p12  ;;  %p1477_p10 = scmp.lt.s32.totalorder %s1743_s24, 2 }
  0x2e   : > { %s1884_s7 = scalar_select %p54_p13, %s1739_s23, %s56_s20  }
  0x2f   : > { %s2208_s30 = scalar_select %p1878_p5, 1, 0 }
  0x30   : > { %p65_p3 = por %p64_p0, %p63_p12  ;;  %s244_s8 = sand.u32 1, %s1739_s23  }
  0x31   : > { %s1347_s9 = sshll.u32 %s244_s8, 5  ;;  %s1382_s10 = sshll.u32 %s1743_s24, 9 }
  0x32   : > { %s1891_s15 = scalar_lea.hbm %s2192_s1, %s1382_s10  ;;  %s248_s16 = scalar_lea.vmem [#allocation2], %s1347_s9 }
  0x33   : > { %s255_s17 = sshll.u32 %s248_s16, 4  ;;  %p1895_p2 = pnand %p1477_p10, %p65_p3  ;;  %s1893_s17 = int_to_ptr.vmem [resolvable:$true] %s255_s17 }
  0x34   : > { %s1899_s20 = scalar_lea.sflag [#allocation3], %s244_s8  ;;  %s1647_s26 = scalar_lea.hbm %s1891_s15, 512 }
  0x35   : > { %p1648_p11 = scmp.ne.s32.totalorder %s1891_s15, %s1647_s26  ;;  %p1649_p7 = pneg %p1895_p2 }
  0x36   : > { %s1652_s9 = scalar_lea.hbm %s2192_s1, 1024  ;;  %p1653_p13 = scmp.lt.s32.totalorder %s1891_s15, %s2192_s1 }
  0x37   : > { %p1650_p9 = pnand %p1649_p7, %p1648_p11  ;;  %p1654_p0 = scmp.lt.s32.totalorder %s1652_s9, %s1647_s26 }
  0x39   : > { %p1651_p12 = pneg %p1650_p9  ;;  %p1655_p10 = por %p1654_p0, %p1653_p13 }
  0x3b   : > { %p1656_p3 = pnand %p1655_p10, %p1651_p12 }
  0x3d   : > { %1659 = shalt.err (!%p1656_p3)
}
  0x3e   : > { %s1660_s8 = scalar_lea.vmem %s1893_s17, 512  ;;  %s1749_s12 = smov [#allocation2]  }
  0x3f   : > { %p1661_p1 = scmp.ne.s32.totalorder %s1893_s17, %s1660_s8  ;;  %s1665_s13 = sshll.u32 %s1749_s12, 4  ;;  %s1666_s13 = int_to_ptr.vmem [resolvable:$false] %s1665_s13 }
  0x40   : > { %s1667_s10 = scalar_lea.vmem %s1666_s13, 1024  ;;  %p1668_p9 = scmp.lt.s32.totalorder %s1893_s17, %s1666_s13 }
  0x41   : > { %p1663_p6 = pnand %p1661_p1, %p1649_p7  ;;  %p1669_p5 = scmp.lt.s32.totalorder %s1667_s10, %s1660_s8 }
  0x43   : > { %p1664_p11 = pneg %p1663_p6  ;;  %p1670_p4 = por %p1669_p5, %p1668_p9 }
  0x45   : > { %p1671_p8 = pnand %p1670_p4, %p1664_p11 }
  0x47   : > { %1674 = shalt.err (!%p1671_p8)
}
  0x48   : > { %s2210_s26 = smov 4   ;;  %s2211_s11 = smov 64  }
  0x49   : > { %1470 = dma.hbm_to_vmem [thread:$0]  (!%p1895_p2), %s1891_s15, 512, %s1893_s17, %s1899_s20, %s2211_s11, %s2211_s11, %s2210_s26  }
  0x4a   : > { %p2212_p1 = scmp.ne.s32.totalorder %s2206_s29, 0 }
  0x4b   : > { %s1926_s12 = sand.u32 (!%p2212_p1), 1, %s1735_s22   ;;  %p2213_p4 = scmp.ne.s32.totalorder (!%p2212_p1), %s2204_s27, 0 }
  0x4c   : > { %274 = sbr.rel (%p2212_p1) target bundleno = 1268 (0x4f4), region = 44  ;;  %s1351_s13 = sshll.u32 (!%p2212_p1), %s1926_s12, 5 }
  0x4d   : > { %s277_s9 = scalar_lea.sflag (!%p2212_p1), [#allocation3], %s1926_s12  ;;  %s1930_s14 = scalar_lea.vmem (!%p2212_p1), [#allocation2], %s1351_s13 }
  0x51   : > { %1718 = dma.done.wait (%p2213_p4), %s277_s9, 512  }
  0x52   : > { %1720 = vsyncadd (%p2213_p4), %s277_s9, 4294966784  ;;  %p2214_p6 = scmp.eq.s32.totalorder %s1811_s25, 0 }
  0x54   : > { %1722 = dma.done.wait (%p2214_p6), [#allocation6], 2048   ;;  %p2215_p8 = pmov %p2214_p6 }
  0x55   : > { %v1750_v0 = vmov 0.0   ;;  %vm1751_vm0 = vmmov 0   ;;  %v1523_v1 = vld [vmem:[#allocation5 + $0x38] sm:$0xff]   ;;  %v1525_v3 = vld [vmem:[#allocation5 + $0x30] sm:$0xff]   ;;  %p325_p5 = scmp.lt.s32.totalorder %s1811_s25, 1  ;;  %v1528_v5 = vld [vmem:[#allocation7 + $0x28] sm:$0xff]   ;;  %v606_v6 = vlaneseq }
  0x56   : > { %1724 = vsyncadd (%p2215_p8), [#allocation6], 4294965248  ;;  %1404 = vmatprep.subr.bf16.mxu0 %v1750_v0  ;;  %1420 = vmatprep.mubr.msk.bf16.mxu0 %vm1751_vm0, %v1750_v0  ;;  %v1524_v2 = vld [vmem:[#allocation7 + $0x38] sm:$0xff]   ;;  %v1526_v4 = vld [vmem:[#allocation7 + $0x30] sm:$0xff]   ;;  %v1752_v37 = vmov 1966171168  }
  0x57   : > { %1405 = vmatpush3.bf16.msra.mxu0 %v1523_v1  ;;  %1424 = vmatprep.subr.bf16.mxu1 %v1524_v2  ;;  %v1527_v7 = vld [vmem:[#allocation5 + $0x28] sm:$0xff]   ;;  %s1946_s27 = scalar_select %p325_p5, %s1811_s25, 1  ;;  %v1530_v8 = vld [vmem:[#allocation7 + $0x20] sm:$0xff]   ;;  %v1949_v9 = vshrl.u32 %v606_v6, 7  ;;  %v1532_v11 = vld [vmem:[#allocation7 + $0x18] sm:$0xff]   ;;  %v604_v38 = vunpack.c.l.s4 %v1752_v37  ;;  %vm878_vm1 = vcmask 1041409  }
  0x58   : > { %1406 = vmatprep.subr.bf16.mxu0 %v1750_v0  ;;  %1425 = vmatpush3.bf16.msra.mxu1 %v1524_v2  ;;  %v1529_v10 = vld [vmem:[#allocation5 + $0x20] sm:$0xff]   ;;  %v1531_v13 = vld [vmem:[#allocation5 + $0x18] sm:$0xff]   ;;  %v1534_v18 = vld [vmem:[#allocation7 + $0x10] sm:$0xff]   ;;  %vm880_vm2 = vcmask 1042434   ;;  %vm882_vm3 = vcmask 1043459   ;;  %vm884_vm4 = vcmask 1044484  }
  0x59   : > { %1426 = vmatprep.subr.bf16.mxu1 %v1526_v4  ;;  %s1356_s29 = sshll.u32 %s1946_s27, 3  ;;  %v1957_v12 = vsub.s32 1, %v1949_v9  ;;  %v1961_v14 = vsub.s32 0, %v1949_v9  ;;  %v1966_v16 = vld [vmem:[%s1930_s14] sm:$0xff]   ;;  %v1969_v17 = vsub.s32 2, %v1949_v9  ;;  %v1974_v20 = vsub.s32 4, %v1949_v9 }
  0x5a   : > { %s333_s18 = scalar_lea.vmem %s2193_s2, %s1356_s29  ;;  %v1533_v21 = vld [vmem:[#allocation5 + $0x10] sm:$0xff]   ;;  %1440 = vmatprep.mubr.bf16.mxu1 %v1966_v16  ;;  %v1983_v24 = vsub.s32 3, %v1949_v9  ;;  %v1536_v25 = vld [vmem:[#allocation7 + $0x8] sm:$0xff]   ;;  %s1355_s20 = sshll.u32 %s1946_s27, 2  ;;  %v1992_v29 = vsub.s32 5, %v1949_v9  ;;  %v1538_v30 = vld [vmem:[#allocation7] sm:$0xff]   ;;  %v605_v39 = vunpack.c.0.s8 %v604_v38 }
  0x5b   : > { %1407 = vmatpush3.bf16.msra.mxu0 %v1525_v3  ;;  %v1963_v15 = vld [vmem:[%s333_s18] sm:$0xff]  ;;  %v1535_v27 = vld [vmem:[#allocation5 + $0x8] sm:$0xff]   ;;  %s328_s10 = scalar_lea.vmem %s2191_s0, %s1355_s20  ;;  %v2004_v34 = vld [vmem:[%s1930_s14 + $0x10] sm:$0xff]   ;;  %vm886_vm5 = vcmask 1045509   ;;  %vm888_vm6 = vcmask 1046534   ;;  %vm890_vm7 = vcmask 1047559  }
  0x5c   : > { %1408 = vmatprep.subr.bf16.mxu0 %v1750_v0  ;;  %1427 = vmatpush3.bf16.msra.mxu1 %v1526_v4  ;;  %v750_v19 = vrot.slane %v1963_v15, %v1957_v12  ;;  %v743_v22 = vrot.slane %v1963_v15, %v1961_v14  ;;  %v757_v23 = vrot.slane %v1963_v15, %v1969_v17  ;;  %v1537_v31 = vld [vmem:[#allocation5] sm:$0xff]   ;;  %v1999_v32 = vld [vmem:[%s1930_s14 + $0x8] sm:$0xff]   ;;  %v2009_v36 = vld [vmem:[%s1930_s14 + $0x18] sm:$0xff]   ;;  %vm893_vm8 = vcmask 64512   ;;  %s1354_s13 = sshll.u32 %s1926_s12, 3  ;;  %s1379_s9 = sshll.u32 %s1811_s25, 7 }
  0x5d   : > { %1428 = vmatprep.subr.bf16.mxu1 %v1528_v5  ;;  %v771_v26 = vrot.slane %v1963_v15, %v1974_v20  ;;  %v764_v28 = vrot.slane %v1963_v15, %v1983_v24  ;;  %v778_v33 = vrot.slane %v1963_v15, %v1992_v29  ;;  %v335_v35 = vld [vmem:[%s328_s10] sm:$0xf]  ;;  %v608_v40 = vsub.s32 %v605_v39, %v1949_v9  ;;  %s324_s14 = scalar_lea.vmem [#allocation8], %s1354_s13  ;;  %s2153_s17 = scalar_lea.hbm %s2197_s6, %s1379_s9 }
  0x5e   : > { %752 = vbcast.lane.b32.xlu1 %v750_v19, 256  ;;  %745 = vbcast.lane.b32.xlu0 %v743_v22, 256  ;;  %s1229_s27 = sshll.u32 %s324_s14, 4  ;;  %s1216_s18 = scalar_lea.sflag [#allocation4], %s1926_s12  ;;  %s1230_s27 = int_to_ptr.vmem [resolvable:$true] %s1229_s27 }
  0x5f   : > { %1409 = vmatpush3.bf16.msra.mxu0 %v1527_v7  ;;  %s1675_s25 = scalar_lea.vmem %s1230_s27, 128  ;;  %p2216_p7 = scmp.ne.s32.totalorder %s2208_s30, 0 }
  0x60   : > { %1410 = vmatprep.subr.bf16.mxu0 %v1750_v0  ;;  %1429 = vmatpush3.bf16.msra.mxu1 %v1528_v5  ;;  %p1676_p2 = scmp.ne.s32.totalorder %s1230_s27, %s1675_s25  ;;  %s1754_s20 = smov [#allocation8]  }
  0x61   : > { %1430 = vmatprep.subr.bf16.mxu1 %v1530_v8  ;;  %s1679_s16 = sshll.u32 %s1754_s20, 4  ;;  %s1680_s16 = int_to_ptr.vmem [resolvable:$false] %s1679_s16 }
  0x62   : > { %759 = vbcast.lane.b32.xlu1 %v757_v23, 256  ;;  %773 = vbcast.lane.b32.xlu0 %v771_v26, 256  ;;  %p1677_p12 = pnand %p1676_p2, %p2216_p7  ;;  %s1681_s8 = scalar_lea.vmem %s1680_s16, 256 }
  0x63   : > { %1411 = vmatpush3.bf16.msra.mxu0 %v1529_v10  ;;  %p1682_p0 = scmp.lt.s32.totalorder %s1230_s27, %s1680_s16  ;;  %p1683_p10 = scmp.lt.s32.totalorder %s1681_s8, %s1675_s25 }
  0x64   : > { %1412 = vmatprep.subr.bf16.mxu0 %v1750_v0  ;;  %1431 = vmatpush3.bf16.msra.mxu1 %v1530_v8  ;;  %p1678_p13 = pneg %p1677_p12 }
  0x65   : > { %1432 = vmatprep.subr.bf16.mxu1 %v1532_v11  ;;  %p1684_p3 = por %p1683_p10, %p1682_p0 }
  0x66   : > { %766 = vbcast.lane.b32.xlu1 %v764_v28, 256 }
  0x67   : > { %1413 = vmatpush3.bf16.msra.mxu0 %v1531_v13  ;;  %p1685_p11 = pnand %p1684_p3, %p1678_p13 }
  0x68   : > { %1414 = vmatprep.subr.bf16.mxu0 %v1750_v0  ;;  %1433 = vmatpush3.bf16.msra.mxu1 %v1532_v11 }
  0x69   : > { %1434 = vmatprep.subr.bf16.mxu1 %v1534_v18 }
  0x6a   : > { %780 = vbcast.lane.b32.xlu1 %v778_v33, 256 }
  0x6b   : > { %1415 = vmatpush3.bf16.msra.mxu0 %v1533_v21 }
  0x6c   : > { %1416 = vmatprep.subr.bf16.mxu0 %v1750_v0  ;;  %1435 = vmatpush3.bf16.msra.mxu1 %v1534_v18 }
  0x6d   : > { %1436 = vmatprep.subr.bf16.mxu1 %v1536_v25 }
  0x6f   : > { %1417 = vmatpush3.bf16.msra.mxu0 %v1535_v27  ;;  %v1377_v27 = vld [vmem:[%s2196_s5] ss:$0 sm:$0xff] }
  0x70   : > { %1418 = vmatprep.subr.bf16.mxu0 %v1750_v0  ;;  %1437 = vmatpush3.bf16.msra.mxu1 %v1536_v25 }
  0x71   : > { %1438 = vmatprep.subr.bf16.mxu1 %v1538_v30 }
  0x73   : > { %1419 = vmatpush3.bf16.msra.mxu0 %v1537_v31 }
  0x74   : > { %1439 = vmatpush3.bf16.msra.mxu1 %v1538_v30 }
  0x76   : > { %1421 = vmatmul.mubr.bf16.vlgmr.msra.gmra.mxu0 %v335_v35 }
  0x77   : > { %1441 = vmatmul.mubr.bf16.vlgmr.msra.gmra.mxu1 %v1999_v32 }
  0x78   : > { %1444 = vmatprep.mubr.bf16.mxu1 %v2004_v34 }
  0x7f   : > { %1445 = vmatmul.mubr.bf16.gmra.mxu1 %v2009_v36 }
 0x136   : > { %v442_v41 = vpop.f32.mrf.mxu0 }
 0x137   : > { %v602_v42 = vcombine.high %v442_v41, %v442_v41  ;;  %v609_v43 = vrot.slane %v442_v41, %v608_v40  ;;  %v1442_v44 = vpop.f32.mrf.mxu1 }
 0x138   : > { %v1422_v45 = vpop.f32.mrf.mxu0 }
 0x139   : > { %v616_v46 = vrot.slane %v602_v42, %v608_v40  ;;  %v617_v47 = vcombine.high %v609_v43, %v609_v43  ;;  %v625_v48 = vrot.slane %v609_v43, %v608_v40  ;;  %v570_v49 = vpop.f32.mrf.mxu1 }
 0x13a   : > { %v445_v50 = vpop.f32.mrf.mxu0 }
 0x13b   : > { %v618_v51 = vcombine.high %v616_v46, %v616_v46  ;;  %v632_v52 = vrot.slane %v616_v46, %v608_v40  ;;  %v639_v53 = vrot.slane %v617_v47, %v608_v40  ;;  %v647_v54 = vcombine.high %v625_v48, %v625_v48  ;;  %v1443_v56 = vpop.f32.mrf.mxu1 }
 0x13c   : > { %v654_v55 = vrot.slane %v625_v48, %v1961_v14  ;;  %v1423_v57 = vpop.f32.mrf.mxu0  ;;  %v1753_v48 = vmov 0   ;;  %v2028_v50 = vsub.s32 6, %v1949_v9 }
 0x13d   : > { %v662_v58 = vrot.slane %v647_v54, %v1961_v14  ;;  %v649_v59 = vcombine.high %v639_v53, %v639_v53  ;;  %v658_v60 = vrot.slane %v639_v53, %v1961_v14  ;;  %v648_v61 = vcombine.high %v632_v52, %v632_v52  ;;  %v573_v63 = vpop.f32.mrf.mxu1  ;;  %1521 = vset.pattern.permute.xlu0 %v1753_v48  ;;  %v753_v53 = vpop.permute.xlu1 %752 }
 0x13e   : > { %v691_v62 = vadd.f32 %v654_v55, %v570_v49  ;;  %v646_v0 = vrot.slane %v618_v51, %v608_v40  ;;  %v670_v18 = vrot.slane %v632_v52, %v1961_v14  ;;  %1522 = vset.pattern.permute.xlu1 %v1753_v48  ;;  %v2025_v49 = vsub.s32 7, %v1949_v9  ;;  %v746_v55 = vpop.permute.xlu0 %745 }
 0x13f   : > { %v693_v1 = vadd.f32 %v1442_v44, %v662_v58  ;;  %v666_v2 = vrot.slane %v649_v59, %v1961_v14  ;;  %v692_v3 = vadd.f32 %v658_v60, %v573_v63  ;;  %v678_v4 = vrot.slane %v648_v61, %v1961_v14  ;;  %v1446_v5 = vpop.f32.mrf.mxu1 }
 0x140   : > { %1547 = vtanh.f32 %v691_v62  ;;  %v650_v7 = vcombine.high %v646_v0, %v646_v0  ;;  %v674_v22 = vrot.slane %v646_v0, %v1961_v14  ;;  %v792_v51 = vrot.slane %v1963_v15, %v2025_v49 }
 0x141   : > { %1549 = vtanh.f32 %v693_v1  ;;  %v694_v8 = vadd.f32 %v1443_v56, %v666_v2  ;;  %v697_v10 = vadd.f32 %v1446_v5, %v678_v4  ;;  %v586_v11 = vpop.f32.mrf.mxu1  ;;  %v785_v52 = vrot.slane %v1963_v15, %v2028_v50  ;;  %v760_v54 = vpop.permute.xlu1 %759 }
 0x142   : > { %1551 = vtanh.f32 %v692_v3  ;;  %v682_v13 = vrot.slane %v650_v7, %v1961_v14  ;;  %v695_v23 = vadd.f32 %v670_v18, %v586_v11  ;;  %v774_v57 = vpop.permute.xlu0 %773 }
 0x143   : > { %1553 = vtanh.f32 %v694_v8  ;;  %v1447_v19 = vpop.f32.mrf.mxu1 }
 0x144   : > { %v698_v21 = vadd.f32 %v1447_v19, %v682_v13  ;;  %1555 = vtanh.f32 %v697_v10  ;;  %v845_v19 = vand.u32 127, %v606_v6 }
 0x145   : > { %v589_v25 = vpop.f32.mrf.mxu1  ;;  %v767_v56 = vpop.permute.xlu1 %766 }
 0x146   : > { %1557 = vtanh.f32 %v698_v21  ;;  %v696_v26 = vadd.f32 %v674_v22, %v589_v25  ;;  %v2051_v21 = vsub.s32 %v845_v19, %v1949_v9 }
 0x147   : > { %1559 = vtanh.f32 %v695_v23 }
 0x148   : > { %1561 = vtanh.f32 %v696_v26 }
 0x149   : > { %v781_v58 = vpop.permute.xlu1 %780 }
 0x14d   : > { %v1548_v28 = vpop.eup %1547 }
 0x14e   : > { %v1550_v30 = vpop.eup %1549  ;;  %v714_v31 = vmul.f32 %v1548_v28, %v1377_v27 }
 0x14f   : > { %v1552_v33 = vpop.eup %1551  ;;  %v716_v35 = vmul.f32 %v1550_v30, %v1377_v27 }
 0x150   : > { %v1554_v37 = vpop.eup %1553  ;;  %722 = vadd.xlane.f32.xlu0 %v714_v31  ;;  %v715_v38 = vmul.f32 %v1552_v33, %v1377_v27 }
 0x151   : > { %726 = vadd.xlane.f32.xlu1 %v716_v35  ;;  %v1556_v39 = vpop.eup %1555  ;;  %v717_v40 = vmul.f32 %v1554_v37, %v1377_v27 }
 0x152   : > { %v720_v42 = vmul.f32 %v1556_v39, %v1377_v27 }
 0x153   : > { %v1558_v41 = vpop.eup %1557 }
 0x154   : > { %724 = vadd.xlane.f32.xlu0 %v715_v38  ;;  %v1560_v43 = vpop.eup %1559  ;;  %v721_v44 = vmul.f32 %v1558_v41, %v1377_v27 }
 0x155   : > { %728 = vadd.xlane.f32.xlu1 %v717_v40  ;;  %v1562_v45 = vpop.eup %1561  ;;  %v718_v46 = vmul.f32 %v1560_v43, %v1377_v27 }
 0x156   : > { %v719_v47 = vmul.f32 %v1562_v45, %v1377_v27 }
 0x158   : > { %734 = vadd.xlane.f32.xlu0 %v720_v42 }
 0x159   : > { %736 = vadd.xlane.f32.xlu1 %v721_v44 }
 0x15c   : > { %730 = vadd.xlane.f32.xlu0 %v718_v46 }
 0x15d   : > { %732 = vadd.xlane.f32.xlu1 %v719_v47 }
 0x16e   : > { %794 = vbcast.lane.b32.xlu1 %v792_v51, 256 }
 0x172   : > { %787 = vbcast.lane.b32.xlu0 %v785_v52, 256 }
 0x1d9   : > { %v723_v59 = vpop.xlane.xlu0 %722 }
 0x1da   : > { %v2034_v60 = vadd.f32 %v746_v55, %v723_v59  ;;  %v727_v61 = vpop.xlane.xlu1 %726 }
 0x1db   : > { %v806_v2 = vadd.f32 %v760_v54, %v727_v61 }
 0x1dc   : > { %821 = vperm.xlu0 %1521, %v2034_v60  }
 0x1dd   : > { %v725_v62 = vpop.xlane.xlu0 %724 }
 0x1de   : > { %v805_v63 = vadd.f32 %v753_v53, %v725_v62  ;;  %v729_v0 = vpop.xlane.xlu1 %728 }
 0x1df   : > { %v2037_v1 = vadd.f32 %v767_v56, %v729_v0 }
 0x1e0   : > { %824 = vperm.xlu1 %1522, %v805_v63  }
 0x1e1   : > { %v735_v15 = vpop.xlane.xlu0 %734  ;;  %830 = vperm.xlu0 %1521, %v2037_v1  }
 0x1e2   : > { %v737_v3 = vpop.xlane.xlu1 %736 }
 0x1e4   : > { %827 = vperm.xlu1 %1522, %v806_v2  }
 0x1e5   : > { %v731_v4 = vpop.xlane.xlu0 %730 }
 0x1e6   : > { %v808_v5 = vadd.f32 %v774_v57, %v731_v4  ;;  %v733_v7 = vpop.xlane.xlu1 %732 }
 0x1e7   : > { %v2040_v8 = vadd.f32 %v781_v58, %v733_v7 }
 0x1e8   : > { %833 = vperm.xlu1 %1522, %v808_v5  }
 0x1e9   : > { %v788_v10 = vpop.permute.xlu0 %787  ;;  %836 = vperm.xlu0 %1521, %v2040_v8  }
 0x1ea   : > { %v2043_v11 = vadd.f32 %v788_v10, %v735_v15  ;;  %v795_v13 = vpop.permute.xlu1 %794 }
 0x1eb   : > { %v2045_v18 = vadd.f32 %v795_v13, %v737_v3 }
 0x1ec   : > { %839 = vperm.xlu1 %1522, %v2043_v11  }
 0x1ed   : > { %842 = vperm.xlu0 %1521, %v2045_v18  }
 0x257   : > { %v822_v23 = vpop.permute.xlu0 %821 }
 0x258   : > { %v849_v26 = vrot.slane %v822_v23, %v2051_v21 }
 0x25b   : > { %v825_v22 = vpop.permute.xlu1 %824 }
 0x25c   : > { %v853_v25 = vrot.slane %v825_v22, %v2051_v21  ;;  %v831_v28 = vpop.permute.xlu0 %830 }
 0x25d   : > { %v861_v6 = vrot.slane %v831_v28, %v2051_v21 }
 0x25e   : > { %v879_v31 = vsel %vm878_vm1, %v853_v25, %v849_v26 }
 0x25f   : > { %v828_v27 = vpop.permute.xlu1 %827 }
 0x260   : > { %v857_v30 = vrot.slane %v828_v27, %v2051_v21 }
 0x262   : > { %v881_v33 = vsel %vm880_vm2, %v857_v30, %v879_v31 }
 0x263   : > { %v834_v9 = vpop.permute.xlu1 %833  ;;  %v883_v38 = vsel %vm882_vm3, %v861_v6, %v881_v33 }
 0x264   : > { %v865_v35 = vrot.slane %v834_v9, %v2051_v21  ;;  %v837_v37 = vpop.permute.xlu0 %836 }
 0x265   : > { %v869_v39 = vrot.slane %v837_v37, %v2051_v21 }
 0x266   : > { %v885_v40 = vsel %vm884_vm4, %v865_v35, %v883_v38 }
 0x267   : > { %v887_v41 = vsel %vm886_vm5, %v869_v39, %v885_v40  ;;  %v840_v42 = vpop.permute.xlu1 %839 }
 0x268   : > { %v873_v43 = vrot.slane %v840_v42, %v2051_v21  ;;  %v843_v44 = vpop.permute.xlu0 %842 }
 0x269   : > { %v877_v45 = vrot.slane %v843_v44, %v2051_v21 }
 0x26a   : > { %v889_v46 = vsel %vm888_vm6, %v873_v43, %v887_v41 }
 0x26b   : > { %v891_v47 = vsel %vm890_vm7, %v877_v45, %v889_v46 }
 0x26c   : > { %v894_v48 = vsel %vm893_vm8, %v891_v47, -inf }
 0x26d   : > { %895 = vmax.xlane.f32.xlu1 %v894_v48 }
 0x2f6   : > { %v896_v51 = vpop.xlane.xlu1 %895 }
 0x2f7   : > { %v901_v52 = vrot.slane %v896_v51, %v1961_v14  ;;  %v905_v53 = vrot.slane %v896_v51, %v1957_v12  ;;  %v909_v54 = vrot.slane %v896_v51, %v1969_v17  ;;  %v913_v58 = vrot.slane %v896_v51, %v1983_v24 }
 0x2f8   : > { %v917_v62 = vrot.slane %v896_v51, %v1974_v20  ;;  %v921_v3 = vrot.slane %v896_v51, %v1992_v29  ;;  %v929_v13 = vrot.slane %v896_v51, %v2025_v49 }
 0x2f9   : > { %v938_v55 = vsub.f32 %v2034_v60, %v901_v52  ;;  %v939_v56 = vsub.f32 %v805_v63, %v905_v53  ;;  %v940_v59 = vsub.f32 %v806_v2, %v909_v54  ;;  %v941_v0 = vsub.f32 %v2037_v1, %v913_v58 }
 0x2fa   : > { %v942_v4 = vsub.f32 %v808_v5, %v917_v62  ;;  %v925_v60 = vrot.slane %v896_v51, %v2028_v50  ;;  %v943_v63 = vsub.f32 %v2040_v8, %v921_v3  ;;  %v945_v5 = vsub.f32 %v2045_v18, %v929_v13 }
 0x2fb   : > { %v946_v57 = vmul.f32 1.442695, %v938_v55  ;;  %v948_v61 = vmul.f32 1.442695, %v939_v56  ;;  %v950_v15 = vmul.f32 1.442695, %v940_v59 }
 0x2fc   : > { %v952_v7 = vmul.f32 1.442695, %v941_v0  ;;  %v954_v10 = vmul.f32 1.442695, %v942_v4  ;;  %v944_v1 = vsub.f32 %v2043_v11, %v925_v60  ;;  %v956_v19 = vmul.f32 1.442695, %v943_v63 }
 0x2fd   : > { %1563 = vpow2.f32 %v946_v57  ;;  %v960_v25 = vmul.f32 1.442695, %v945_v5  ;;  %v1095_v5 = vunpack.c.h.bf16 %v1966_v16 }
 0x2fe   : > { %1565 = vpow2.f32 %v948_v61  ;;  %v958_v8 = vmul.f32 1.442695, %v944_v1 }
 0x2ff   : > { %1567 = vpow2.f32 %v950_v15 }
 0x300   : > { %1569 = vpow2.f32 %v952_v7 }
 0x301   : > { %1571 = vpow2.f32 %v954_v10 }
 0x302   : > { %1573 = vpow2.f32 %v956_v19  ;;  %v1094_v19 = vunpack.c.l.bf16 %v1966_v16 }
 0x303   : > { %1575 = vpow2.f32 %v958_v8 }
 0x304   : > { %1577 = vpow2.f32 %v960_v25 }
 0x30a   : > { %v2079_v2 = vpop.eup %1563 }
 0x30b   : > { %971 = vperm.xlu0 %1521, %v2079_v2   ;;  %v2084_v22 = vpop.eup %1565 }
 0x30c   : > { %v2088_v23 = vpop.eup %1567 }
 0x30d   : > { %v2091_v26 = vpop.eup %1569 }
 0x30e   : > { %v1572_v11 = vpop.eup %1571 }
 0x30f   : > { %974 = vperm.xlu0 %1521, %v2084_v22   ;;  %v2094_v27 = vpop.eup %1573 }
 0x310   : > { %v2097_v18 = vpop.eup %1575 }
 0x311   : > { %v2100_v28 = vpop.eup %1577 }
 0x313   : > { %977 = vperm.xlu0 %1521, %v2088_v23  }
 0x317   : > { %980 = vperm.xlu0 %1521, %v2091_v26  }
 0x31b   : > { %983 = vperm.xlu0 %1521, %v1572_v11  }
 0x31f   : > { %986 = vperm.xlu0 %1521, %v2094_v27  }
 0x323   : > { %989 = vperm.xlu0 %1521, %v2097_v18  }
 0x327   : > { %992 = vperm.xlu0 %1521, %v2100_v28  }
 0x386   : > { %v972_v30 = vpop.permute.xlu0 %971 }
 0x387   : > { %v997_v39 = vrot.slane %v972_v30, %v2051_v21 }
 0x38a   : > { %v975_v31 = vpop.permute.xlu0 %974 }
 0x38b   : > { %v1001_v37 = vrot.slane %v975_v31, %v2051_v21 }
 0x38d   : > { %v1026_v43 = vsel %vm878_vm1, %v1001_v37, %v997_v39 }
 0x38e   : > { %v978_v33 = vpop.permute.xlu0 %977 }
 0x38f   : > { %v1005_v38 = vrot.slane %v978_v33, %v2051_v21 }
 0x391   : > { %v1027_v45 = vsel %vm880_vm2, %v1005_v38, %v1026_v43 }
 0x392   : > { %v981_v6 = vpop.permute.xlu0 %980 }
 0x393   : > { %v1009_v40 = vrot.slane %v981_v6, %v2051_v21 }
 0x395   : > { %v1028_v47 = vsel %vm882_vm3, %v1009_v40, %v1027_v45  ;;  %v1099_v40 = vunpack.c.h.bf16 %v2004_v34 }
 0x396   : > { %v984_v9 = vpop.permute.xlu0 %983 }
 0x397   : > { %v1013_v41 = vrot.slane %v984_v9, %v2051_v21 }
 0x399   : > { %v1029_v48 = vsel %vm884_vm4, %v1013_v41, %v1028_v47 }
 0x39a   : > { %v987_v35 = vpop.permute.xlu0 %986 }
 0x39b   : > { %v1017_v44 = vrot.slane %v987_v35, %v2051_v21 }
 0x39d   : > { %v1030_v52 = vsel %vm886_vm5, %v1017_v44, %v1029_v48 }
 0x39e   : > { %v990_v42 = vpop.permute.xlu0 %989 }
 0x39f   : > { %v1021_v46 = vrot.slane %v990_v42, %v2051_v21 }
 0x3a1   : > { %v1031_v54 = vsel %vm888_vm6, %v1021_v46, %v1030_v52 }
 0x3a2   : > { %v993_v51 = vpop.permute.xlu0 %992 }
 0x3a3   : > { %v1025_v53 = vrot.slane %v993_v51, %v2051_v21  ;;  %v1100_v51 = vunpack.c.l.bf16 %v2009_v36 }
 0x3a5   : > { %v1032_v55 = vsel %vm890_vm7, %v1025_v53, %v1031_v54 }
 0x3a6   : > { %v1034_v56 = vsel %vm893_vm8, %v1032_v55, 0.0 }
 0x3a7   : > { %1035 = vadd.xlane.f32.xlu0 %v1034_v56 }
 0x430   : > { %v1036_v57 = vpop.xlane.xlu0 %1035 }
 0x431   : > { %v1057_v58 = vrot.slane %v1036_v57, %v1974_v20  ;;  %v1041_v59 = vrot.slane %v1036_v57, %v1961_v14  ;;  %v1045_v61 = vrot.slane %v1036_v57, %v1957_v12  ;;  %v1049_v62 = vrot.slane %v1036_v57, %v1969_v17 }
 0x432   : > { %v1053_v21 = vrot.slane %v1036_v57, %v1983_v24  ;;  %v1061_v0 = vrot.slane %v1036_v57, %v1992_v29  ;;  %v1065_v14 = vrot.slane %v1036_v57, %v2028_v50  ;;  %v1069_v17 = vrot.slane %v1036_v57, %v2025_v49 }
 0x433   : > { %1579 = vrcp.f32 %v1057_v58 }
 0x434   : > { %1581 = vrcp.f32 %v1041_v59 }
 0x435   : > { %1583 = vrcp.f32 %v1045_v61  ;;  %v1101_v61 = vunpack.c.h.bf16 %v2009_v36 }
 0x436   : > { %1585 = vrcp.f32 %v1049_v62 }
 0x437   : > { %1587 = vrcp.f32 %v1053_v21 }
 0x438   : > { %1589 = vrcp.f32 %v1061_v0 }
 0x439   : > { %1591 = vrcp.f32 %v1065_v14 }
 0x43a   : > { %1593 = vrcp.f32 %v1069_v17 }
 0x440   : > { %v1580_v15 = vpop.eup %1579 }
 0x441   : > { %v1582_v3 = vpop.eup %1581  ;;  %v1087_v4 = vmul.f32 %v1580_v15, %v1572_v11  ;;  %v1098_v11 = vunpack.c.l.bf16 %v2004_v34 }
 0x442   : > { %v1079_v20 = vmul.f32 %v1582_v3, %v2079_v2  ;;  %v1584_v12 = vpop.eup %1583 }
 0x443   : > { %1124 = vperm.xlu0 %1521, %v1087_v4   ;;  %v1081_v7 = vmul.f32 %v1584_v12, %v2084_v22  ;;  %v1586_v24 = vpop.eup %1585 }
 0x444   : > { %1104 = vperm.xlu1 %1522, %v1079_v20   ;;  %v1083_v29 = vmul.f32 %v1586_v24, %v2088_v23  ;;  %v1588_v60 = vpop.eup %1587 }
 0x445   : > { %v1085_v63 = vmul.f32 %v1588_v60, %v2091_v26  ;;  %v1590_v10 = vpop.eup %1589  ;;  %v1096_v26 = vunpack.c.l.bf16 %v1999_v32 }
 0x446   : > { %v1089_v50 = vmul.f32 %v1590_v10, %v2094_v27  ;;  %v1592_v2 = vpop.eup %1591 }
 0x447   : > { %v1091_v13 = vmul.f32 %v1592_v2, %v2097_v18  ;;  %v1594_v1 = vpop.eup %1593 }
 0x448   : > { %1109 = vperm.xlu1 %1522, %v1081_v7   ;;  %v1093_v49 = vmul.f32 %v1594_v1, %v2100_v28  ;;  %v1097_v28 = vunpack.c.h.bf16 %v1999_v32 }
 0x44c   : > { %1114 = vperm.xlu1 %1522, %v1083_v29  }
 0x450   : > { %1119 = vperm.xlu1 %1522, %v1085_v63  }
 0x454   : > { %1129 = vperm.xlu1 %1522, %v1089_v50  }
 0x458   : > { %1134 = vperm.xlu1 %1522, %v1091_v13  }
 0x45c   : > { %1139 = vperm.xlu1 %1522, %v1093_v49  }
 0x4be   : > { %v1125_v27 = vpop.permute.xlu0 %1124 }
 0x4bf   : > { %v1105_v22 = vpop.permute.xlu1 %1104  ;;  %v1146_v6 = vmul.f32 %v1125_v27, %v1098_v11 }
 0x4c0   : > { %v1142_v8 = vmul.f32 %v1105_v22, %v1094_v19 }
 0x4c1   : > { %v1174_v41 = vrot.slane %v1146_v6, 4 }
 0x4c2   : > { %v1150_v18 = vrot.slane %v1142_v8, 4 }
 0x4c3   : > { %v1110_v23 = vpop.permute.xlu1 %1109  ;;  %v1175_v32 = vadd.f32 %v1174_v41, %v1146_v6 }
 0x4c4   : > { %v1143_v25 = vmul.f32 %v1110_v23, %v1095_v5  ;;  %v1151_v37 = vadd.f32 %v1150_v18, %v1142_v8 }
 0x4c5   : > { %v1176_v62 = vrot.slane %v1175_v32, 2 }
 0x4c6   : > { %v1156_v30 = vrot.slane %v1143_v25, 4  ;;  %v1152_v44 = vrot.slane %v1151_v37, 2 }
 0x4c7   : > { %v1115_v31 = vpop.permute.xlu1 %1114  ;;  %v1177_v24 = vadd.f32 %v1176_v62, %v1175_v32 }
 0x4c8   : > { %v1144_v33 = vmul.f32 %v1115_v31, %v1096_v26  ;;  %v1157_v9 = vadd.f32 %v1156_v30, %v1143_v25  ;;  %v1153_v55 = vadd.f32 %v1152_v44, %v1151_v37 }
 0x4c9   : > { %v1178_v49 = vrot.slane %v1177_v24, 1 }
 0x4ca   : > { %v1162_v35 = vrot.slane %v1144_v33, 4  ;;  %v1158_v42 = vrot.slane %v1157_v9, 2  ;;  %v1154_v3 = vrot.slane %v1153_v55, 1 }
 0x4cb   : > { %v1120_v38 = vpop.permute.xlu1 %1119  ;;  %v1179_v11 = vadd.f32 %v1178_v49, %v1177_v24 }
 0x4cc   : > { %v1163_v16 = vadd.f32 %v1162_v35, %v1144_v33  ;;  %v1145_v39 = vmul.f32 %v1120_v38, %v1097_v28  ;;  %v1159_v52 = vadd.f32 %v1158_v42, %v1157_v9  ;;  %v1155_v10 = vadd.f32 %v1154_v3, %v1153_v55 }
 0x4ce   : > { %v1168_v43 = vrot.slane %v1145_v39, 4  ;;  %v1164_v45 = vrot.slane %v1163_v16, 2  ;;  %v1160_v21 = vrot.slane %v1159_v52, 1 }
 0x4cf   : > { %v1130_v46 = vpop.permute.xlu1 %1129 }
 0x4d0   : > { %v1169_v47 = vadd.f32 %v1168_v43, %v1145_v39  ;;  %v1147_v48 = vmul.f32 %v1130_v46, %v1099_v40  ;;  %v1165_v56 = vadd.f32 %v1164_v45, %v1163_v16  ;;  %v1161_v29 = vadd.f32 %v1160_v21, %v1159_v52 }
 0x4d2   : > { %v1170_v53 = vrot.slane %v1169_v47, 2  ;;  %v1180_v54 = vrot.slane %v1147_v48, 4  ;;  %v1166_v4 = vrot.slane %v1165_v56, 1  ;;  %v1206_v19 = vsel %vm878_vm1, %v1161_v29, %v1155_v10 }
 0x4d3   : > { %v1135_v57 = vpop.permute.xlu1 %1134 }
 0x4d4   : > { %v1171_v58 = vadd.f32 %v1170_v53, %v1169_v47  ;;  %v1181_v59 = vadd.f32 %v1180_v54, %v1147_v48  ;;  %v1148_v34 = vmul.f32 %v1135_v57, %v1100_v51  ;;  %v1167_v50 = vadd.f32 %v1166_v4, %v1165_v56 }
 0x4d6   : > { %v1182_v0 = vrot.slane %v1181_v59, 2  ;;  %v1186_v15 = vrot.slane %v1148_v34, 4  ;;  %v1172_v14 = vrot.slane %v1171_v58, 1  ;;  %v1207_v8 = vsel %vm880_vm2, %v1167_v50, %v1206_v19 }
 0x4d7   : > { %v1140_v20 = vpop.permute.xlu1 %1139 }
 0x4d8   : > { %v1183_v12 = vadd.f32 %v1182_v0, %v1181_v59  ;;  %v1187_v7 = vadd.f32 %v1186_v15, %v1148_v34  ;;  %v1149_v17 = vmul.f32 %v1140_v20, %v1101_v61  ;;  %v1173_v2 = vadd.f32 %v1172_v14, %v1171_v58 }
 0x4da   : > { %v1188_v60 = vrot.slane %v1187_v7, 2  ;;  %v1192_v63 = vrot.slane %v1149_v17, 4  ;;  %v1184_v36 = vrot.slane %v1183_v12, 1  ;;  %v1208_v23 = vsel %vm882_vm3, %v1173_v2, %v1207_v8 }
 0x4db   : > { %v1209_v18 = vsel %vm884_vm4, %v1179_v11, %v1208_v23 }
 0x4dc   : > { %v1189_v13 = vadd.f32 %v1188_v60, %v1187_v7  ;;  %v1193_v1 = vadd.f32 %v1192_v63, %v1149_v17  ;;  %v1185_v25 = vadd.f32 %v1184_v36, %v1183_v12 }
 0x4de   : > { %v1190_v22 = vrot.slane %v1189_v13, 1  ;;  %v1194_v5 = vrot.slane %v1193_v1, 2  ;;  %v1210_v31 = vsel %vm886_vm5, %v1185_v25, %v1209_v18 }
 0x4e0   : > { %v1195_v26 = vadd.f32 %v1194_v5, %v1193_v1  ;;  %v1191_v27 = vadd.f32 %v1190_v22, %v1189_v13 }
 0x4e2   : > { %v1196_v30 = vrot.slane %v1195_v26, 1  ;;  %v1211_v28 = vsel %vm888_vm6, %v1191_v27, %v1210_v31 }
 0x4e4   : > { %v1197_v33 = vadd.f32 %v1196_v30, %v1195_v26 }
 0x4e6   : > { %v1212_v6 = vsel %vm890_vm7, %v1197_v33, %v1211_v28 }
 0x4e7   : > { %1214 = vst [vmem:[%s324_s14] sm:$0xff] %v1212_v6 }
 0x4e8   : > { %1688 = shalt.err (!%p1685_p11)
}
 0x4e9   : > { %s1689_s10 = scalar_lea.hbm %s2153_s17, 128  ;;  %s1693_s11 = scalar_lea.hbm %s2197_s6, 256 }
 0x4ea   : > { %p1690_p9 = scmp.ne.s32.totalorder %s2153_s17, %s1689_s10  ;;  %p1694_p6 = scmp.lt.s32.totalorder %s2153_s17, %s2197_s6 }
 0x4eb   : > { %p1695_p8 = scmp.lt.s32.totalorder %s1693_s11, %s1689_s10 }
 0x4ec   : > { %p1691_p1 = pnand %p1690_p9, %p2216_p7 }
 0x4ed   : > { %p1696_p5 = por %p1695_p8, %p1694_p6 }
 0x4ee   : > { %p1692_p4 = pneg %p1691_p1 }
 0x4f0   : > { %p1697_p2 = pnand %p1696_p5, %p1692_p4 }
 0x4f2   : > { %1700 = shalt.err (!%p1697_p2)
}
 0x4f3   : > { %1458 = dma.vmem_to_hbm [thread:$0]  (%p2216_p7), %s1230_s27, 128, %s2153_s17, %s1216_s18  }
 0x4f4 PF: > { %s1241_s14 = sand.u32 1, %s1731_s21   ;;  %p2217_p12 = scmp.ne.s32.totalorder %s2205_s28, 0 }
 0x4f5   : > { %p2218_p13 = scmp.ge.s32.totalorder %s1743_s24, 2  ;;  %s1242_s29 = scalar_lea.sflag [#allocation4], %s1241_s14 }
 0x4f7   : > { %p1472_p0 = pnand %p2218_p13, %p2217_p12 }
 0x4f9   : > { %p1473_p10 = pneg %p1472_p0 }
 0x4fb   : > { %1726 = dma.done.wait (%p1473_p10), %s1242_s29, 128  }
 0x4fc   : > { %1728 = vsyncadd (%p1473_p10), %s1242_s29, 4294967168  ;;  %p20_p3 = scmp.ge.s32.totalorder %s1868_s19, 4   ;;  %s2219_s21 = smov %s1735_s22 }
 0x4fd   : > { %s2220_s22 = smov %s1739_s23  ;;  %s2221_s23 = smov %s1884_s7 }
 0x4fe   : > { %s2222_s24 = smov %s1868_s19  ;;  %22 = sbr.rel (!%p20_p3) target bundleno = 6 (0x6), region = 103 }
 0x503   :  { %1247 = vsyncpa [#allocation3], 1 }
 0x504   :  { %1249 = vsyncpa [#allocation3 + $0x1], 1 }
 0x505   :  { %1250 = vsyncpa [#allocation6], 1 }
 0x506   :  { %1251 = vsyncpa [#allocation4], 1 }
 0x507   :  { %1253 = vsyncpa [#allocation4 + $0x1], 1 }

</bundles_post_ra>
